<compile_context>
chip_gen: v7x
topology: tpu7x:2x2x1
jax: 0.10.0
libtpu: 0.0.40
codegen_flags: <defaults>
</compile_context>

<pallas_src>
import jax
import jax.numpy as jnp
from jax import lax
from jax.experimental import pallas as pl
from jax.experimental.pallas import tpu as pltpu


def _mil_kernel(x_ref, w_ref, b_ref, o_ref, cd_buf, m_buf, s_buf):
    """One (batch, N-tile) grid step.

    x_ref  : (1, TN, D)   activations, native dtype
    w_ref  : (D, 2C)      fused [cls | prop] weight, native dtype
    b_ref  : (1, 2C)      fused bias, f32
    o_ref  : (1, N, C)    output block, resident across the N-tile axis
    cd_buf : (N, 2C) f32  merged staging: [class softmax | raw prop logits]
    m_buf  : (1, C)  f32  running column max of prop logits (online softmax)
    s_buf  : (1, C)  f32  running rescaled column sum of exp(prop logits)
    """
    n = pl.program_id(1)
    num_n = pl.num_programs(1)
    tn = x_ref.shape[1]
    N = o_ref.shape[1]
    C = o_ref.shape[2]

    @pl.when(n == 0)
    def _init():
        m_buf[...] = jnp.full(m_buf.shape, -jnp.inf, dtype=m_buf.dtype)
        s_buf[...] = jnp.zeros(s_buf.shape, dtype=s_buf.dtype)

    # Single fused MXU matmul: one pass of x through the MXU for both heads.
    x = x_ref[0]                                                    # (TN, D)
    cd = jnp.dot(x, w_ref[...], preferred_element_type=jnp.float32)
    cd = cd + b_ref[...]                                            # (TN, 2C) f32

    c = cd[:, :C]                                                   # cls logits
    d = cd[:, C:]                                                   # prop logits

    # Class softmax (last axis) is fully contained inside this tile.
    c_max = jnp.max(c, axis=-1, keepdims=True)
    c_exp = jnp.exp(c - c_max)
    inv_c = pl.reciprocal(jnp.sum(c_exp, axis=-1, keepdims=True), approx=True)
    c_prob = c_exp * inv_c

    # Online (flash-style) proposal-softmax statistics over the N axis.
    m_old = m_buf[...]                                              # (1, C)
    m_new = jnp.maximum(m_old, jnp.max(d, axis=0, keepdims=True))
    s_buf[...] = (s_buf[...] * jnp.exp(m_old - m_new)
                  + jnp.sum(jnp.exp(d - m_new), axis=0, keepdims=True))
    m_buf[...] = m_new

    # One merged staging store per tile: [class probs | raw prop logits].
    staged = jnp.concatenate([c_prob, d], axis=-1)                  # (TN, 2C) f32
    row0 = n * tn
    if tn % 8 == 0:
        row0 = pl.multiple_of(row0, 8)
    cd_buf[pl.ds(row0, tn), :] = staged

    # Finalize once all tiles are staged: a single exp+mul+store pass, chunked
    # so the working set stays in vregs (no (N, 128-pad) f32 spills).
    @pl.when(n == num_n - 1)
    def _finalize():
        m = m_buf[...]                                              # (1, C)
        inv_s = 1.0 / s_buf[...]                                    # exact divide
        num_chunks = N // tn

        def body(i, carry):
            r0 = i * tn
            if tn % 8 == 0:
                r0 = pl.multiple_of(r0, 8)
            blk = cd_buf[pl.ds(r0, tn), :]                          # (tn, 2C)
            cp = blk[:, :C]
            dl = blk[:, C:]
            o_ref[0, pl.ds(r0, tn), :] = (cp * jnp.exp(dl - m) * inv_s
                                          ).astype(o_ref.dtype)
            return carry

        lax.fori_loop(0, num_chunks, body, 0, unroll=num_chunks <= 16)


def _ceil_to(v, m):
    return ((v + m - 1) // m) * m


def _sublane_align(dtype):
    """Row multiple for sublane packing: 8 for f32, 16 for bf16, 32 for 8-bit."""
    return max(8, 32 // jnp.dtype(dtype).itemsize)


def _vmem_estimate(tn, N, D, C, in_dtype, out_dtype):
    """Padded VMEM footprint (bytes) of one pipelined step at tile size tn."""
    in_b = jnp.dtype(in_dtype).itemsize
    out_b = jnp.dtype(out_dtype).itemsize
    sub_in = _sublane_align(in_dtype)
    sub_out = _sublane_align(out_dtype)
    return (2 * _ceil_to(tn, sub_in) * _ceil_to(D, 128) * in_b        # x tile (x2 bufs)
            + 2 * _ceil_to(D, sub_in) * _ceil_to(2 * C, 128) * in_b   # fused weight
            + 2 * 8 * 128 * 4                                         # fused bias
            + 2 * _ceil_to(N, sub_out) * _ceil_to(C, 128) * out_b     # resident output
            + _ceil_to(N, 8) * _ceil_to(2 * C, 128) * 4               # merged staging
            + 2 * 8 * 128 * 4)                                        # m/s stats


def _choose_tile_n(N, align, target, fits):
    """Largest divisor of N that is `align`-aligned, <= target and fits VMEM."""
    cands = [t for t in range(min(target, N), 0, -1)
             if N % t == 0 and (t % align == 0 or t == N)]
    if not cands:
        cands = [N]
    for t in cands:
        if fits(t):
            return t
    return cands[-1]


def _vmem_budget_bytes():
    """~80% of physical per-core VMEM (64 MiB on v7x, 128 MiB on v5e/v6e)."""
    try:
        phys = int(pltpu.get_tpu_info().vmem_capacity_bytes)
    except Exception:
        phys = 64 * 1024 * 1024   # conservative fallback (v7x-sized)
    return int(0.8 * phys)


def mil_forward(x, wc, bc, wp, bp, *, tile_n=None, out_dtype=None):
    """MIL forward. x: (B, N, D); wc/wp: (C, D) torch layout; bc/bp: (C,)."""
    B, N, D = x.shape
    C = wc.shape[0]
    # Note: output dtype follows x by default (bf16 in -> bf16 out); pass
    # out_dtype=jnp.float32 for strict fp32 parity with the PyTorch module.
    out_dtype = x.dtype if out_dtype is None else out_dtype

    # Fuse the two projections: one (D, 2C) weight, one (1, 2C) f32 bias.
    w_fused = jnp.concatenate([wc.T, wp.T], axis=1).astype(x.dtype)      # (D, 2C)
    b_fused = jnp.concatenate([bc, bp]).reshape(1, 2 * C).astype(jnp.float32)

    budget = _vmem_budget_bytes()
    align = _sublane_align(x.dtype)
    # Large default tile to amortize the ~0.35us per-grid-step overhead on this
    # HBM-bound kernel; the VMEM fit check shrinks it when D is large.
    target = tile_n if tile_n is not None else (2048 if D <= 2048 else 1024)
    fits = lambda t: _vmem_estimate(t, N, D, C, x.dtype, out_dtype) <= budget
    TN = _choose_tile_n(N, align, target, fits)
    num_n = N // TN

    est = _vmem_estimate(TN, N, D, C, x.dtype, out_dtype)
    vmem_limit = int(min(max(int(1.3 * est), 32 * 1024 * 1024), budget))

    grid_spec = pltpu.PrefetchScalarGridSpec(
        num_scalar_prefetch=0,
        grid=(B, num_n),
        in_specs=[
            pl.BlockSpec((1, TN, D), lambda b, n: (b, n, 0)),   # x tile
            pl.BlockSpec((D, 2 * C), lambda b, n: (0, 0)),      # fused weight
            pl.BlockSpec((1, 2 * C), lambda b, n: (0, 0)),      # fused bias
        ],
        out_specs=pl.BlockSpec((1, N, C), lambda b, n: (b, 0, 0)),
        scratch_shapes=[
            pltpu.VMEM((N, 2 * C), jnp.float32),   # merged staging buffer
            pltpu.VMEM((1, C), jnp.float32),       # running column max
            pltpu.VMEM((1, C), jnp.float32),       # running rescaled column sum
        ],
    )

    return pl.pallas_call(
        _mil_kernel,
        out_shape=jax.ShapeDtypeStruct((B, N, C), out_dtype),
        grid_spec=grid_spec,
        compiler_params=pltpu.CompilerParams(
            dimension_semantics=("parallel", "arbitrary"),
            vmem_limit_bytes=vmem_limit),
    )(x, w_fused, b_fused)


def mil_reference(x, wc, bc, wp, bp):
    xf = x.astype(jnp.float32)
    c = jnp.einsum("bnd,cd->bnc", xf, wc.astype(jnp.float32)) + bc
    d = jnp.einsum("bnd,cd->bnc", xf, wp.astype(jnp.float32)) + bp
    return jax.nn.softmax(c, axis=2) * jax.nn.softmax(d, axis=1)


if __name__ == "__main__":
    key = jax.random.PRNGKey(0)

    def make_inputs(k, B, N, D, C, dtype):
        kx, kwc, kwp = jax.random.split(k, 3)
        x = jax.random.normal(kx, (B, N, D), dtype=jnp.float32).astype(dtype)
        # _init_weights: weight ~ N(0, 0.01), bias = 0.
        wc = (0.01 * jax.random.normal(kwc, (C, D), dtype=jnp.float32)).astype(dtype)
        bc = jnp.zeros((C,), dtype=jnp.float32)
        wp = (0.01 * jax.random.normal(kwp, (C, D), dtype=jnp.float32)).astype(dtype)
        bp = jnp.zeros((C,), dtype=jnp.float32)
        return x, wc, bc, wp, bp

    k1, k2, k3 = jax.random.split(key, 3)

    # 1) Small shapes matching the module (single N tile): B=2, N=8, D=32, C=4.
    x, wc, bc, wp, bp = make_inputs(k1, 2, 8, 32, 4, jnp.float32)
    out = jax.block_until_ready(mil_forward(x, wc, bc, wp, bp))
    ref = jax.block_until_ready(mil_reference(x, wc, bc, wp, bp))
    assert out.shape == (2, 8, 4)
    assert jnp.allclose(out, ref, atol=1e-3, rtol=1e-3)

    # 2) Multi-tile path: online proposal softmax reduced across 4 N tiles.
    x, wc, bc, wp, bp = make_inputs(k2, 2, 64, 128, 4, jnp.float32)
    out = jax.block_until_ready(mil_forward(x, wc, bc, wp, bp, tile_n=16))
    ref = jax.block_until_ready(mil_reference(x, wc, bc, wp, bp))
    assert jnp.allclose(out, ref, atol=1e-3, rtol=1e-3)

    # 3) Native-bf16 path: bf16 activations/weights feed the MXU directly.
    x, wc, bc, wp, bp = make_inputs(k3, 2, 32, 128, 4, jnp.bfloat16)
    out = jax.block_until_ready(mil_forward(x, wc, bc, wp, bp, tile_n=16))
    ref = jax.block_until_ready(mil_reference(x, wc, bc, wp, bp))
    assert jnp.allclose(out.astype(jnp.float32), ref, atol=1e-2, rtol=1e-2)

    print("KERNEL_OK")
</pallas_src>

<mosaic_0001>
module attributes {stable_mosaic.version = 11 : i64} {
  func.func @_mil_kernel(%arg0: i32, %arg1: i32, %arg2: memref<1x8x32xf32, #tpu.memory_space<vmem>>, %arg3: memref<32x8xf32, #tpu.memory_space<vmem>>, %arg4: memref<1x8xf32, #tpu.memory_space<vmem>>, %arg5: memref<1x8x4xf32, #tpu.memory_space<vmem>>, %arg6: memref<8x8xf32, #tpu.memory_space<vmem>>, %arg7: memref<1x4xf32, #tpu.memory_space<vmem>>, %arg8: memref<1x4xf32, #tpu.memory_space<vmem>>) attributes {dimension_semantics = [#tpu.dimension_semantics<parallel>, #tpu.dimension_semantics<arbitrary>], iteration_bounds = array<i64: 2, 1>, scalar_prefetch = 0 : i64, scratch_operands = 3 : i64, tpu.core_type = #tpu.core_type<tc>, window_params = [{transform_indices = @transform_0, window_bounds = array<i64: 1, 8, 32>}, {pipeline_mode = #tpu.pipeline_mode<synchronous>, transform_indices = @transform_1, window_bounds = array<i64: 32, 8>}, {pipeline_mode = #tpu.pipeline_mode<synchronous>, transform_indices = @transform_2, window_bounds = array<i64: 1, 8>}, {transform_indices = @transform_3, window_bounds = array<i64: 1, 8, 4>}]} {
    %c0_i32 = arith.constant 0 : i32
    %0 = arith.cmpi eq, %arg1, %c0_i32 : i32
    %1 = arith.extui %0 : i1 to i32
    %c0_i32_0 = arith.constant 0 : i32
    %2 = arith.cmpi ne, %1, %c0_i32_0 : i32
    scf.if %2 {
      %cst_22 = arith.constant 0xFF800000 : f32
      %46 = vector.broadcast %cst_22 : f32 to vector<1x4xf32>
      %c0_23 = arith.constant 0 : index
      %c0_24 = arith.constant 0 : index
      %47 = vector.load %arg7[%c0_23, %c0_24] : memref<1x4xf32, #tpu.memory_space<vmem>>, vector<1x4xf32>
      tpu.vector_store %arg7[%c0_23, %c0_24], %46 {strides = array<i32>} : memref<1x4xf32, #tpu.memory_space<vmem>>, vector<1x4xf32>,
      %cst_25 = arith.constant 0.000000e+00 : f32
      %48 = vector.broadcast %cst_25 : f32 to vector<1x4xf32>
      %c0_26 = arith.constant 0 : index
      %c0_27 = arith.constant 0 : index
      %49 = vector.load %arg8[%c0_26, %c0_27] : memref<1x4xf32, #tpu.memory_space<vmem>>, vector<1x4xf32>
      tpu.vector_store %arg8[%c0_26, %c0_27], %48 {strides = array<i32>} : memref<1x4xf32, #tpu.memory_space<vmem>>, vector<1x4xf32>,
    } else {
    }
    %c0 = arith.constant 0 : index
    %c0_1 = arith.constant 0 : index
    %c0_2 = arith.constant 0 : index
    %3 = vector.load %arg2[%c0, %c0_1, %c0_2] : memref<1x8x32xf32, #tpu.memory_space<vmem>>, vector<1x8x32xf32>
    %4 = vector.shape_cast %3 : vector<1x8x32xf32> to vector<8x32xf32>
    %c0_3 = arith.constant 0 : index
    %c0_4 = arith.constant 0 : index
    %5 = vector.load %arg3[%c0_3, %c0_4] : memref<32x8xf32, #tpu.memory_space<vmem>>, vector<32x8xf32>
    %cst = arith.constant dense<0.000000e+00> : vector<8x8xf32>
    %6 = tpu.matmul %4, %5, %cst {dimension_numbers = #tpu.dot_dimension_numbers<[1], [0], [0], [1], [0, 0, 1, 1], [], []>} : vector<8x32xf32>, vector<32x8xf32>, vector<8x8xf32> -> vector<8x8xf32>
    %c0_5 = arith.constant 0 : index
    %c0_6 = arith.constant 0 : index
    %7 = vector.load %arg4[%c0_5, %c0_6] : memref<1x8xf32, #tpu.memory_space<vmem>>, vector<1x8xf32>
    %8 = vector.broadcast %7 : vector<1x8xf32> to vector<8x8xf32>
    %9 = arith.addf %6, %8 : vector<8x8xf32>
    %10 = vector.extract_strided_slice %9 {offsets = [0, 0], sizes = [8, 4], strides = [1, 1]} : vector<8x8xf32> to vector<8x4xf32>
    %11 = vector.extract_strided_slice %9 {offsets = [0, 4], sizes = [8, 4], strides = [1, 1]} : vector<8x8xf32> to vector<8x4xf32>
    %cst_7 = arith.constant dense<0xFF800000> : vector<8xf32>
    %12 = vector.multi_reduction <maximumf>, %10, %cst_7 [1] : vector<8x4xf32> to vector<8xf32>
    %13 = vector.shape_cast %12 : vector<8xf32> to vector<8x1xf32>
    %14 = vector.broadcast %13 : vector<8x1xf32> to vector<8x4xf32>
    %15 = arith.subf %10, %14 : vector<8x4xf32>
    %16 = math.exp %15 : vector<8x4xf32>
    %cst_8 = arith.constant dense<0.000000e+00> : vector<8xf32>
    %17 = vector.multi_reduction <add>, %16, %cst_8 [1] : vector<8x4xf32> to vector<8xf32>
    %18 = vector.shape_cast %17 : vector<8xf32> to vector<8x1xf32>
    %19 = tpu.reciprocal %18 {approx = true} : vector<8x1xf32> -> vector<8x1xf32>
    %20 = vector.broadcast %19 : vector<8x1xf32> to vector<8x4xf32>
    %21 = arith.mulf %16, %20 : vector<8x4xf32>
    %c0_9 = arith.constant 0 : index
    %c0_10 = arith.constant 0 : index
    %22 = vector.load %arg7[%c0_9, %c0_10] : memref<1x4xf32, #tpu.memory_space<vmem>>, vector<1x4xf32>
    %cst_11 = arith.constant dense<0xFF800000> : vector<4xf32>
    %23 = vector.multi_reduction <maximumf>, %11, %cst_11 [0] : vector<8x4xf32> to vector<4xf32>
    %24 = vector.shape_cast %23 : vector<4xf32> to vector<1x4xf32>
    %25 = arith.maximumf %22, %24 : vector<1x4xf32>
    %c0_12 = arith.constant 0 : index
    %c0_13 = arith.constant 0 : index
    %26 = vector.load %arg8[%c0_12, %c0_13] : memref<1x4xf32, #tpu.memory_space<vmem>>, vector<1x4xf32>
    %27 = arith.subf %22, %25 : vector<1x4xf32>
    %28 = math.exp %27 : vector<1x4xf32>
    %29 = arith.mulf %26, %28 : vector<1x4xf32>
    %30 = vector.broadcast %25 : vector<1x4xf32> to vector<8x4xf32>
    %31 = arith.subf %11, %30 : vector<8x4xf32>
    %32 = math.exp %31 : vector<8x4xf32>
    %cst_14 = arith.constant dense<0.000000e+00> : vector<4xf32>
    %33 = vector.multi_reduction <add>, %32, %cst_14 [0] : vector<8x4xf32> to vector<4xf32>
    %34 = vector.shape_cast %33 : vector<4xf32> to vector<1x4xf32>
    %35 = arith.addf %29, %34 : vector<1x4xf32>
    %c0_15 = arith.constant 0 : index
    %c0_16 = arith.constant 0 : index
    %36 = vector.load %arg8[%c0_15, %c0_16] : memref<1x4xf32, #tpu.memory_space<vmem>>, vector<1x4xf32>
    tpu.vector_store %arg8[%c0_15, %c0_16], %35 {strides = array<i32>} : memref<1x4xf32, #tpu.memory_space<vmem>>, vector<1x4xf32>,
    %c0_17 = arith.constant 0 : index
    %c0_18 = arith.constant 0 : index
    %37 = vector.load %arg7[%c0_17, %c0_18] : memref<1x4xf32, #tpu.memory_space<vmem>>, vector<1x4xf32>
    tpu.vector_store %arg7[%c0_17, %c0_18], %25 {strides = array<i32>} : memref<1x4xf32, #tpu.memory_space<vmem>>, vector<1x4xf32>,
    %38 = tpu.concatenate %21, %11 in 1 : vector<8x4xf32>, vector<8x4xf32> -> vector<8x8xf32>
    %c8_i32 = arith.constant 8 : i32
    %39 = arith.muli %arg1, %c8_i32 : i32
    %40 = tpu.assume_multiple %39, 8 : i32
    %41 = arith.index_cast %40 : i32 to index
    %c0_19 = arith.constant 0 : index
    %42 = vector.load %arg6[%41, %c0_19] : memref<8x8xf32, #tpu.memory_space<vmem>>, vector<8x8xf32>
    tpu.vector_store %arg6[%41, %c0_19], %38 {strides = array<i32>} : memref<8x8xf32, #tpu.memory_space<vmem>>, vector<8x8xf32>,
    %c0_i32_20 = arith.constant 0 : i32
    %43 = arith.cmpi eq, %arg1, %c0_i32_20 : i32
    %44 = arith.extui %43 : i1 to i32
    %c0_i32_21 = arith.constant 0 : i32
    %45 = arith.cmpi ne, %44, %c0_i32_21 : i32
    scf.if %45 {
      %c0_22 = arith.constant 0 : index
      %c0_23 = arith.constant 0 : index
      %46 = vector.load %arg7[%c0_22, %c0_23] : memref<1x4xf32, #tpu.memory_space<vmem>>, vector<1x4xf32>
      %c0_24 = arith.constant 0 : index
      %c0_25 = arith.constant 0 : index
      %47 = vector.load %arg8[%c0_24, %c0_25] : memref<1x4xf32, #tpu.memory_space<vmem>>, vector<1x4xf32>
      %cst_26 = arith.constant 1.000000e+00 : f32
      %48 = vector.broadcast %cst_26 : f32 to vector<1x4xf32>
      %49 = arith.divf %48, %47 : vector<1x4xf32>
      %c0_i32_27 = arith.constant 0 : i32
      %c8_i32_28 = arith.constant 8 : i32
      %50 = arith.muli %c0_i32_27, %c8_i32_28 : i32
      %51 = tpu.assume_multiple %50, 8 : i32
      %52 = arith.index_cast %51 : i32 to index
      %c0_29 = arith.constant 0 : index
      %53 = vector.load %arg6[%52, %c0_29] : memref<8x8xf32, #tpu.memory_space<vmem>>, vector<8x8xf32>
      %54 = vector.extract_strided_slice %53 {offsets = [0, 0], sizes = [8, 4], strides = [1, 1]} : vector<8x8xf32> to vector<8x4xf32>
      %55 = vector.extract_strided_slice %53 {offsets = [0, 4], sizes = [8, 4], strides = [1, 1]} : vector<8x8xf32> to vector<8x4xf32>
      %56 = vector.broadcast %46 : vector<1x4xf32> to vector<8x4xf32>
      %57 = arith.subf %55, %56 : vector<8x4xf32>
      %58 = math.exp %57 : vector<8x4xf32>
      %59 = arith.mulf %54, %58 : vector<8x4xf32>
      %60 = vector.broadcast %49 : vector<1x4xf32> to vector<8x4xf32>
      %61 = arith.mulf %59, %60 : vector<8x4xf32>
      %c0_30 = arith.constant 0 : index
      %62 = arith.index_cast %51 : i32 to index
      %c0_31 = arith.constant 0 : index
      %63 = vector.load %arg5[%c0_30, %62, %c0_31] : memref<1x8x4xf32, #tpu.memory_space<vmem>>, vector<1x8x4xf32>
      %64 = vector.shape_cast %63 : vector<1x8x4xf32> to vector<8x4xf32>
      %65 = vector.shape_cast %61 : vector<8x4xf32> to vector<1x8x4xf32>
      tpu.vector_store %arg5[%c0_30, %62, %c0_31], %65 {strides = array<i32>} : memref<1x8x4xf32, #tpu.memory_space<vmem>>, vector<1x8x4xf32>,
      %c1_i32 = arith.constant 1 : i32
    } else {
    }
    return
  }
  func.func @transform_0(%arg0: i32, %arg1: i32) -> (i32, i32, i32) {
    %c0_i32 = arith.constant 0 : i32
    %c0_i32_0 = arith.constant 0 : i32
    return %arg0, %arg1, %c0_i32 : i32, i32, i32
  }
  func.func @transform_1(%arg0: i32, %arg1: i32) -> (i32, i32) {
    %c0_i32 = arith.constant 0 : i32
    %c0_i32_0 = arith.constant 0 : i32
    %c0_i32_1 = arith.constant 0 : i32
    return %c0_i32, %c0_i32_0 : i32, i32
  }
  func.func @transform_2(%arg0: i32, %arg1: i32) -> (i32, i32) {
    %c0_i32 = arith.constant 0 : i32
    %c0_i32_0 = arith.constant 0 : i32
    %c0_i32_1 = arith.constant 0 : i32
    return %c0_i32, %c0_i32_0 : i32, i32
  }
  func.func @transform_3(%arg0: i32, %arg1: i32) -> (i32, i32, i32) {
    %c0_i32 = arith.constant 0 : i32
    %c0_i32_0 = arith.constant 0 : i32
    %c0_i32_1 = arith.constant 0 : i32
    return %arg0, %c0_i32, %c0_i32_0 : i32, i32, i32
  }
}

</mosaic_0001>

<bundles_post_ra>
// kernel: tpu_custom_call.1
= control target key start
LH: loop header
LB: loop body
LE: loop exit
PB: predicated region body
PF: predicated region fallthrough
CT: control target
= control target key end

     0   :  { %s598_s12 = smov 0   ;;  %s600_s13 = smov 0   ;;  %s670_s0 = inlined_call_operand.vmem [shape: f32[2,8,32], index: 0, kind: input, shape index: {}]   ;;  %s671_s1 = inlined_call_operand.vmem [shape: f32[32,8], index: 1, kind: input, shape index: {}]   ;;  %s672_s2 = inlined_call_operand.vmem [shape: f32[1,8], index: 2, kind: input, shape index: {}]   ;;  %s673_s3 = inlined_call_operand.vmem [shape: f32[2,8,4], index: 3, kind: output, shape index: {}]  }
   0x1   :  { %s602_s14 = smov 0  }
   0x2 LB: > { %s25_s15 = sadd.s32 1, %s565_s13  ;;  %p474_p0 = scmp.ge.s32.totalorder %s569_s14, 1  ;;  %s569_s14 = sphi %s602_s14, %s13_s14   ;;  %s565_s13 = sphi %s600_s13, %s675_s13   ;;  %s561_s12 = sphi %s598_s12, %s674_s12  }
   0x3   : > { %p27_p1 = scmp.ge.s32.totalorder %s25_s15, 2  ;;  %p153_p2 = scmp.lt.s32.totalorder %s569_s14, 3 }
   0x5   : > { %s677_s15 = smov (%p27_p1, %s25_s15), 0  ;;  %p154_p3 = pnand %p474_p0, %p153_p2 }
   0x6   : > { %v197_v0 = vld [vmem:[%s671_s1] sm:$0xff] (!%p154_p3)  ;;  %v198_v1 = vld [vmem:[%s671_s1 + $0x8] sm:$0xff] (!%p154_p3)  ;;  %v199_v2 = vld [vmem:[%s671_s1 + $0x10] sm:$0xff] (!%p154_p3)  ;;  %vm193_vm0 = vcmask (!%p154_p3), 24576   ;;  %v571_v3 = vmov (!%p154_p3), 0.0|0.0   ;;  %v572_v6 = vmov (!%p154_p3), -inf   ;;  %v307_v21 = vlaneseq (!%p154_p3) }
   0x7   : > { %157 = sbr.rel (%p154_p3) target bundleno = 718 (0x2ce), region = 32  ;;  %498 = vmatprep.subr.bf16.mxu0 (!%p154_p3), %v571_v3  ;;  %v499_v4 = vpack.c.bf16 (!%p154_p3), %v198_v1, %v197_v0  ;;  %v200_v5 = vld [vmem:[%s671_s1 + $0x18] sm:$0xff] (!%p154_p3)  ;;  %194 = vst.msk [vmem:[#allocation3] sm:$0x1] (!%p154_p3), %vm193_vm0, %v572_v6  ;;  %p178_p4 = scmp.lt.s32.totalorder (!%p154_p3), %s561_s12, 1  ;;  %v573_v7 = vmov (!%p154_p3), 0.0  }
   0x8   : > { %195 = vst.msk [vmem:[#allocation4] sm:$0x1] (!%p154_p3), %vm193_vm0, %v573_v7  ;;  %vm574_vm1 = vmmov (!%p154_p3), 0   ;;  %v502_v8 = vpack.c.bf16 (!%p154_p3), %v200_v5, %v199_v2  ;;  %vm208_vm2 = vcmask (!%p154_p3), 261120   ;;  %v477_v10 = vld [vmem:[%s672_s2] ss:$0 sm:$0xff] (!%p154_p3) }
   0x9   : > { %495 = vmatprep.mubr.msk.f32.mxu0 (!%p154_p3), %vm574_vm1, %v573_v7  ;;  %500 = vmatpush3.bf16.msra.mxu0 (!%p154_p3), %v499_v4  ;;  %vm282_vm3 = vcmask (!%p154_p3), 31744   ;;  %vm295_vm4 = vcmask (!%p154_p3), 64544   ;;  %v575_v19 = vmov (!%p154_p3), 1966171168   ;;  %v643_v25 = vshrl.u32 (!%p154_p3), %v307_v21, 7  ;;  %s576_s30 = smov (!%p154_p3), 124  }
   0xa   : > { %501 = vmatprep.subr.bf16.mxu0 (!%p154_p3), %v571_v3  ;;  %v305_v20 = vunpack.c.l.s4 (!%p154_p3), %v575_v19  ;;  %s577_s4 = smov (!%p154_p3), 4   ;;  %vm370_vm5 = vcmask (!%p154_p3), 64512  }
   0xb   : > { %v330_v32 = vsub.s32 (!%p154_p3), 0, %v643_v25 }
   0xc   : > { %v306_v24 = vunpack.c.0.s8 (!%p154_p3), %v305_v20 }
   0xd   : > { %503 = vmatpush3.bf16.msra.mxu0 (!%p154_p3), %v502_v8 }
   0xe   : > { %s679_s12 = smov (!%p178_p4, %s561_s12), 1  ;;  %v309_v27 = vsub.s32 %v306_v24, %v643_v25  ;;  %v294_v31 = vld [vmem:[#allocation3] sm:$0x1] }
   0xf   : > { %s475_s24 = sshll.u32 %s679_s12, 3  ;;  %v322_v2 = vld [vmem:[#allocation4] sm:$0x1] }
  0x10   : > { %s184_s27 = scalar_lea.vmem %s670_s0, %s475_s24  ;;  %s188_s7 = scalar_lea.vmem %s673_s3, %s475_s24 }
  0x11   : > { %v196_v9 = vld [vmem:[%s184_s27] sm:$0xff] }
  0x12   : > { %496 = vmatmul.mubr.msk.f32.vlgmr.msra.gmra.mrb[0].mxu0 %vm208_vm2, %v196_v9 }
  0xe5   : > { %v278_v11 = vpop.f32.mrb[0].mxu0 }
  0xe6   : > { %v279_v12 = vadd.f32 %v477_v10, %v278_v11  ;;  %v497_v13 = vpop.f32.mrb[1].mxu0 }
  0xe8   : > { %v283_v14 = vsel %vm282_vm3, %v279_v12, -inf  ;;  %v296_v15 = vsel %vm295_vm4, %v279_v12, -inf }
  0xe9   : > { %284 = vmax.xlane.f32.xlu0 %v283_v14  ;;  %v297_v16 = vrot.slane %v296_v15, 4 }
  0xeb   : > { %v298_v17 = vmax.f32 %v296_v15, %v297_v16 }
  0xed   : > { %v299_v18 = vrot.slane %v298_v17, 2 }
  0xef   : > { %v300_v22 = vmax.f32 %v298_v17, %v299_v18 }
  0xf1   : > { %v301_v23 = vrot.slane %v300_v22, 1 }
  0xf3   : > { %v302_v26 = vmax.f32 %v300_v22, %v301_v23 }
  0xf5   : > { %v310_v28 = vrot.slane %v302_v26, %v309_v27 }
  0xf7   : > { %v317_v29 = vrot.slane %v310_v28, %v309_v27 }
  0xff   : > { %318 = vrot.lane.b32.xlu0 %v317_v29, %s576_s30 }
 0x176   : > { %v285_v30 = vpop.xlane.xlu0 %284 }
 0x177   : > { %v286_v38 = vsub.f32 %v279_v12, %v285_v30 }
 0x179   : > { %v287_v39 = vmul.f32 1.442695, %v286_v38 }
 0x17a   : > { %v319_v33 = vpop.permute.xlu0 %318 }
 0x17b   : > { %v321_v34 = vmax.f32 %v294_v31, %v319_v33  ;;  %535 = vpow2.f32 %v287_v39 }
 0x17d   : > { %v323_v35 = vsub.f32 %v294_v31, %v321_v34  ;;  %366 = vst.msk [vmem:[#allocation3] sm:$0x1] %vm193_vm0, %v321_v34  ;;  %v331_v36 = vrot.slane %v321_v34, %v330_v32 }
 0x17f   : > { %332 = vrot.lane.b32.xlu1 %v331_v36, %s577_s4  ;;  %v324_v0 = vmul.f32 1.442695, %v323_v35 }
 0x184   : > { %v479_v37 = vld [vmem:[#allocation3] ss:$0 sm:$0xff] }
 0x185   : > { %385 = vrot.lane.b32.xlu0 %v479_v37, %s577_s4  ;;  %v536_v40 = vpop.eup %535 }
 0x186   : > { %v289_v41 = vsel %vm282_vm3, %v536_v40, 0.0 }
 0x1a3   : > { %290 = vadd.xlane.f32.xlu1 %v289_v41 }
 0x1f1   : > { %v333_v42 = vpop.permute.xlu1 %332 }
 0x1f2   : > { %v335_v43 = vsub.f32 %v279_v12, %v333_v42 }
 0x1f4   : > { %v336_v44 = vmul.f32 1.442695, %v335_v43 }
 0x1f6   : > { %537 = vpow2.f32 %v336_v44 }
 0x1f7   : > { %v386_v59 = vpop.permute.xlu0 %385 }
 0x200   : > { %v538_v45 = vpop.eup %537 }
 0x201   : > { %v338_v46 = vsel %vm295_vm4, %v538_v45, 0.0 }
 0x202   : > { %v339_v47 = vrot.slane %v338_v46, 4 }
 0x204   : > { %v340_v48 = vadd.f32 %v339_v47, %v338_v46 }
 0x206   : > { %v341_v49 = vrot.slane %v340_v48, 2 }
 0x208   : > { %v342_v50 = vadd.f32 %v341_v49, %v340_v48 }
 0x20a   : > { %v343_v51 = vrot.slane %v342_v50, 1 }
 0x20c   : > { %v344_v52 = vadd.f32 %v343_v51, %v342_v50 }
 0x20e   : > { %v352_v53 = vrot.slane %v344_v52, %v309_v27 }
 0x210   : > { %v359_v54 = vrot.slane %v352_v53, %v309_v27 }
 0x212   : > { %360 = vrot.lane.b32.xlu0 %v359_v54, %s576_s30 }
 0x230   : > { %v291_v55 = vpop.xlane.xlu1 %290 }
 0x231   : > { %539 = vrcp.f32 %v291_v55 }
 0x23b   : > { %v540_v56 = vpop.eup %539 }
 0x23c   : > { %v293_v57 = vmul.f32 %v540_v56, %v536_v40 }
 0x23e   : > { %v367_v58 = vsel %vm282_vm3, %v293_v57, %v279_v12 }
 0x23f   : > { %371 = vst.msk [vmem:[#allocation2] sm:$0xff] %vm370_vm5, %v367_v58 }
 0x246   : > { %v379_v60 = vld [vmem:[#allocation2] sm:$0xff] }
 0x247   : > { %v388_v61 = vsub.f32 %v379_v60, %v386_v59 }
 0x249   : > { %v389_v62 = vmul.f32 1.442695, %v388_v61 }
 0x24b   : > { %541 = vpow2.f32 %v389_v62 }
 0x24c   : > { %543 = vpow2.f32 %v324_v0 }
 0x255   : > { %v542_v63 = vpop.eup %541 }
 0x256   : > { %392 = vrot.lane.b32.xlu0 %v542_v63, %s576_s30  ;;  %v544_v1 = vpop.eup %543 }
 0x257   : > { %v326_v3 = vmul.f32 %v544_v1, %v322_v2 }
 0x284   : > { %v361_v4 = vpop.permute.xlu0 %360 }
 0x285   : > { %v363_v5 = vadd.f32 %v361_v4, %v326_v3 }
 0x287   : > { %365 = vst.msk [vmem:[#allocation4] sm:$0x1] %vm193_vm0, %v363_v5 }
 0x28e   : > { %v376_v6 = vld [vmem:[#allocation4] sm:$0x1] }
 0x28f   : > { %545 = vrcp.f32 %v376_v6 }
 0x299   : > { %v546_v7 = vpop.eup %545 }
 0x29a   : > { %v400_v10 = vrot.slane %v546_v7, %v330_v32 }
 0x2c8   : > { %v393_v8 = vpop.permute.xlu0 %392 }
 0x2c9   : > { %v395_v9 = vmul.f32 %v393_v8, %v379_v60 }
 0x2cb   : > { %v402_v11 = vmul.f32 %v400_v10, %v395_v9 }
 0x2cd   : > { %403 = vst.msk [vmem:[%s188_s7] sm:$0xff] %vm282_vm3, %v402_v11 }
 0x2ce PF: > { %s13_s14 = sadd.s32 1, %s569_s14   ;;  %s674_s12 = smov %s565_s13 }
 0x2cf   : > { %p10_p5 = scmp.ge.s32.totalorder %s13_s14, 4   ;;  %s675_s13 = smov %s677_s15 }
 0x2d1   :  { %12 = sbr.rel (!%p10_p5) target bundleno = 2 (0x2), region = 71 }

</bundles_post_ra>
